<compile_context>
chip_gen: v7x
topology: tpu7x:2x2x1
jax: 0.10.0
libtpu: 0.0.40
codegen_flags: <defaults>
</compile_context>

<pallas_src>
import jax
import jax.numpy as jnp
from jax.experimental import pallas as pl
from jax.experimental.pallas import tpu as pltpu

_LN_EPS = 1e-5
_FUSE_MAX_ELEMS = 512 * 1024       # fused single-pass if C*HW <= this
_TILE_BUDGET_ELEMS = 512 * 1024    # per-step x-block element budget when tiling
_MAX_TILE = 2048                   # max spatial tile width (lanes)
_VMEM_LIMIT = 32 * 1024 * 1024     # explicit scoped-VMEM limit (v5e default: 16 MiB)
_NEG_BIG = -1e30


def _sigmoid(t):
    # Numerically safe sigmoid (bounded tanh intermediate, EUP op).
    return 0.5 * (jnp.tanh(0.5 * t) + 1.0)


def _channel_mlp(ctx, w1t, b1, g, be, w2, b2):
    """Conv1x1(C->P) -> LayerNorm([P,1,1]) -> ReLU -> Conv1x1(P->C) on (C,1) ctx.

    Tiny C x P problem: VPU broadcast-mul + reductions instead of degenerate
    (K<=P, N=1) MXU matmuls.
    """
    h = jnp.sum(w1t[...] * ctx, axis=0, keepdims=True) + b1[...]        # (1, P)
    mu = jnp.mean(h, axis=1, keepdims=True)
    var = jnp.mean((h - mu) * (h - mu), axis=1, keepdims=True)
    h = (h - mu) * jax.lax.rsqrt(var + _LN_EPS) * g[...] + be[...]      # LayerNorm
    h = jnp.maximum(h, 0.0)                                             # ReLU
    return jnp.sum(w2[...] * h, axis=1, keepdims=True) + b2[...]        # (C, 1)


# ------------------------- path 1: fused single pass -------------------------
def _make_fused_kernel(pool, has_add, has_mul, inv_hw):
    def kernel(*refs):
        idx = 0
        x_ref = refs[idx]; idx += 1                       # (C, HW) native dtype
        if pool == "att":
            wm_ref, bm_ref = refs[idx], refs[idx + 1]; idx += 2
        if has_add:
            a_refs = refs[idx:idx + 6]; idx += 6
        if has_mul:
            m_refs = refs[idx:idx + 6]; idx += 6
        o_ref = refs[idx]                                 # (C, HW) native dtype

        x = x_ref[...].astype(jnp.float32)

        if pool == "att":
            logits = jnp.sum(x * wm_ref[...], axis=0, keepdims=True) + bm_ref[...]
            m = jnp.max(logits, axis=1, keepdims=True)
            e = jnp.exp(logits - m)                                       # (1, HW)
            ctx = (jnp.sum(x * e, axis=1, keepdims=True) /
                   jnp.sum(e, axis=1, keepdims=True))                     # (C, 1)
        else:
            ctx = jnp.sum(x, axis=1, keepdims=True) * inv_hw

        out = x
        if has_mul:
            out = out * _sigmoid(_channel_mlp(ctx, *m_refs))
        if has_add:
            out = out + _channel_mlp(ctx, *a_refs)
        o_ref[...] = out.astype(o_ref.dtype)

    return kernel


# ------------------ path 2: streaming pool pass (phase 1) --------------------
def _make_pool_kernel(pool, has_add, has_mul, HW, tile, needs_mask):
    inv_hw = 1.0 / HW

    def kernel(*refs):
        idx = 0
        x_ref = refs[idx]; idx += 1                       # (C, tile) native dtype
        if pool == "att":
            wm_ref, bm_ref = refs[idx], refs[idx + 1]; idx += 2
        if has_add:
            a_refs = refs[idx:idx + 6]; idx += 6
        if has_mul:
            m_refs = refs[idx:idx + 6]; idx += 6
        n_out = int(has_add) + int(has_mul)
        out_refs = refs[idx:idx + n_out]; idx += n_out    # each (C, 1) f32
        if pool == "att":
            m_s, z_s, acc_s = refs[idx], refs[idx + 1], refs[idx + 2]
        else:
            acc_s = refs[idx]

        t = pl.program_id(1)
        last = pl.num_programs(1) - 1

        @pl.when(t == 0)
        def _init():
            acc_s[...] = jnp.zeros_like(acc_s)
            if pool == "att":
                m_s[...] = jnp.full_like(m_s, _NEG_BIG)
                z_s[...] = jnp.zeros_like(z_s)

        xb = x_ref[...].astype(jnp.float32)               # (C, tile)
        if needs_mask:                                    # ragged last tile only
            pos = tile * t + jax.lax.broadcasted_iota(jnp.int32, (1, tile), 1)
            lane_ok = pos < HW
            xb = jnp.where(lane_ok, xb, 0.0)

        if pool == "att":
            logits = jnp.sum(xb * wm_ref[...], axis=0, keepdims=True) + bm_ref[...]
            if needs_mask:
                logits = jnp.where(lane_ok, logits, _NEG_BIG)
            m_new = jnp.maximum(m_s[...], jnp.max(logits, axis=1, keepdims=True))
            scale = jnp.exp(m_s[...] - m_new)                             # (1, 1)
            e = jnp.exp(logits - m_new)                                   # (1, tile)
            z_s[...] = z_s[...] * scale + jnp.sum(e, axis=1, keepdims=True)
            acc_s[...] = acc_s[...] * scale + jnp.sum(xb * e, axis=1, keepdims=True)
            m_s[...] = m_new
        else:
            acc_s[...] = acc_s[...] + jnp.sum(xb, axis=1, keepdims=True)

        @pl.when(t == last)
        def _finalize():
            if pool == "att":
                ctx = acc_s[...] / z_s[...]      # once per image: exact divide is free
            else:
                ctx = acc_s[...] * inv_hw
            oi = 0
            if has_add:
                out_refs[oi][...] = _channel_mlp(ctx, *a_refs)
                oi += 1
            if has_mul:
                out_refs[oi][...] = _sigmoid(_channel_mlp(ctx, *m_refs))

    return kernel


# ------------------ path 2: broadcast apply pass (phase 2) -------------------
def _make_apply_kernel(has_add, has_mul):
    def kernel(*refs):
        idx = 0
        x_ref = refs[idx]; idx += 1                       # (C, tile) native dtype
        if has_mul:
            mul_ref = refs[idx]; idx += 1                 # (C, 1) f32, sigmoid already applied
        if has_add:
            add_ref = refs[idx]; idx += 1                 # (C, 1) f32
        o_ref = refs[idx]

        out = x_ref[...].astype(jnp.float32)
        if has_mul:
            out = out * mul_ref[...]
        if has_add:
            out = out + add_ref[...]
        o_ref[...] = out.astype(o_ref.dtype)

    return kernel


# --------------------------------- wrapper -----------------------------------
def _const_spec(arr, grid_rank):
    nd = arr.ndim
    if grid_rank == 1:
        return pl.BlockSpec(arr.shape, lambda n, _nd=nd: (0,) * _nd)
    return pl.BlockSpec(arr.shape, lambda n, t, _nd=nd: (0,) * _nd)


def _pick_spatial_tile(HW, C):
    if HW <= _MAX_TILE:
        return HW                      # single full-width tile (equals full dim)
    t = _TILE_BUDGET_ELEMS // max(C, 1)
    t = max(128, min(_MAX_TILE, (t // 128) * 128))
    return t


def feablock_forward(x_nchw, params, *, pool, fusions,
                     fuse_max_elems=_FUSE_MAX_ELEMS):
    """FEABlock forward. NCHW in/out (PyTorch convention), dtype-preserving."""
    assert pool in ("avg", "att")
    has_add = "channel_add" in fusions
    has_mul = "channel_mul" in fusions
    assert has_add or has_mul

    N, C, H, W = x_nchw.shape
    HW = H * W
    dtype = x_nchw.dtype
    itemsize = int(x_nchw.dtype.itemsize)
    x2 = x_nchw.reshape(N, C, HW)       # pure view: no transpose, no dtype cast

    # Tiny parameter tensors (f32, broadcast-friendly layouts).
    consts = []
    if pool == "att":
        consts += [params["conv_mask_w"].reshape(C, 1),
                   params["conv_mask_b"].reshape(1, 1)]

    def mlp_consts(prefix):
        P = params[prefix + "_w1"].shape[0]
        return [params[prefix + "_w1"].reshape(P, C).T,   # (C, P)
                params[prefix + "_b1"].reshape(1, P),
                params[prefix + "_ln_g"].reshape(1, P),
                params[prefix + "_ln_b"].reshape(1, P),
                params[prefix + "_w2"].reshape(C, P),
                params[prefix + "_b2"].reshape(C, 1)]

    if has_add:
        consts += mlp_consts("add")
    if has_mul:
        consts += mlp_consts("mul")
    consts = [jnp.asarray(c, jnp.float32) for c in consts]

    # ============================ fused single pass ==========================
    if C * HW <= fuse_max_elems:
        in_specs = ([pl.BlockSpec((pl.Squeezed(), C, HW), lambda n: (n, 0, 0))] +
                    [_const_spec(c, 1) for c in consts])
        out = pl.pallas_call(
            _make_fused_kernel(pool, has_add, has_mul, 1.0 / HW),
            out_shape=jax.ShapeDtypeStruct((N, C, HW), dtype),
            grid_spec=pltpu.PrefetchScalarGridSpec(
                num_scalar_prefetch=0,
                grid=(N,),
                in_specs=in_specs,
                out_specs=pl.BlockSpec((pl.Squeezed(), C, HW),
                                       lambda n: (n, 0, 0))),
            compiler_params=pltpu.CompilerParams(
                dimension_semantics=("parallel",),
                vmem_limit_bytes=_VMEM_LIMIT),
            cost_estimate=pl.CostEstimate(
                flops=int(6 * N * C * HW),
                transcendentals=int(N * HW),
                bytes_accessed=int(2 * N * C * HW * itemsize)),
        )(x2, *consts)
        return out.reshape(N, C, H, W)

    # ====================== two-phase: pool then apply =======================
    tile = _pick_spatial_tile(HW, C)
    n_tiles = (HW + tile - 1) // tile
    needs_mask = (HW % tile) != 0

    x_spec = pl.BlockSpec((pl.Squeezed(), C, tile), lambda n, t: (n, 0, t))
    col_spec = pl.BlockSpec((pl.Squeezed(), C, 1), lambda n, t: (n, 0, 0))
    const_specs = [_const_spec(c, 2) for c in consts]

    # -- phase 1: streaming spatial pool -> channel-add / channel-mul columns
    n_cols = int(has_add) + int(has_mul)
    if pool == "att":
        scratch = [pltpu.VMEM((1, 1), jnp.float32),       # running max
                   pltpu.VMEM((1, 1), jnp.float32),       # running sum(exp)
                   pltpu.VMEM((C, 1), jnp.float32)]       # running sum(x * exp)
    else:
        scratch = [pltpu.VMEM((C, 1), jnp.float32)]       # running sum(x)

    cols = pl.pallas_call(
        _make_pool_kernel(pool, has_add, has_mul, HW, tile, needs_mask),
        out_shape=tuple(jax.ShapeDtypeStruct((N, C, 1), jnp.float32)
                        for _ in range(n_cols)),
        grid_spec=pltpu.PrefetchScalarGridSpec(
            num_scalar_prefetch=0,
            grid=(N, n_tiles),
            in_specs=[x_spec] + const_specs,
            out_specs=tuple(col_spec for _ in range(n_cols)),
            scratch_shapes=scratch),
        compiler_params=pltpu.CompilerParams(
            dimension_semantics=("parallel", "arbitrary"),
            vmem_limit_bytes=_VMEM_LIMIT),
        cost_estimate=pl.CostEstimate(
            flops=int(4 * N * C * HW),
            transcendentals=int(N * HW),
            bytes_accessed=int(N * C * HW * itemsize)),
    )(x2, *consts)
    if not isinstance(cols, (tuple, list)):
        cols = (cols,)

    add_col = mul_col = None
    ci = 0
    if has_add:
        add_col = cols[ci]; ci += 1
    if has_mul:
        mul_col = cols[ci]

    # -- phase 2: re-stream x and apply the broadcast channel terms
    apply_inputs = [x2]
    apply_specs = [x_spec]
    if has_mul:
        apply_inputs.append(mul_col); apply_specs.append(col_spec)
    if has_add:
        apply_inputs.append(add_col); apply_specs.append(col_spec)

    out = pl.pallas_call(
        _make_apply_kernel(has_add, has_mul),
        out_shape=jax.ShapeDtypeStruct((N, C, HW), dtype),
        grid_spec=pltpu.PrefetchScalarGridSpec(
            num_scalar_prefetch=0,
            grid=(N, n_tiles),
            in_specs=apply_specs,
            out_specs=x_spec),
        compiler_params=pltpu.CompilerParams(
            dimension_semantics=("parallel", "parallel"),
            vmem_limit_bytes=_VMEM_LIMIT),
        cost_estimate=pl.CostEstimate(
            flops=int(2 * N * C * HW),
            transcendentals=0,
            bytes_accessed=int(2 * N * C * HW * itemsize)),
    )(*apply_inputs)

    return out.reshape(N, C, H, W)


# -------------------------- pure-JAX reference (NCHW) -----------------------
def _ref_feablock(x, params, *, pool, fusions):
    B, C, H, W = x.shape
    HW = H * W
    x = x.astype(jnp.float32)
    if pool == "att":
        wm = params["conv_mask_w"].reshape(C)
        bm = params["conv_mask_b"].reshape(())
        logits = jnp.einsum("bchw,c->bhw", x, wm).reshape(B, HW) + bm
        p = jax.nn.softmax(logits, axis=1)
        ctx = jnp.einsum("bcs,bs->bc", x.reshape(B, C, HW), p)            # (B, C)
    else:
        ctx = jnp.mean(x.reshape(B, C, HW), axis=2)

    def mlp(prefix):
        P = params[prefix + "_w1"].shape[0]
        w1 = params[prefix + "_w1"].reshape(P, C)
        b1 = params[prefix + "_b1"].reshape(P)
        g = params[prefix + "_ln_g"].reshape(P)
        be = params[prefix + "_ln_b"].reshape(P)
        w2 = params[prefix + "_w2"].reshape(C, P)
        b2 = params[prefix + "_b2"].reshape(C)
        h = ctx @ w1.T + b1                                               # (B, P)
        mu = jnp.mean(h, axis=1, keepdims=True)
        var = jnp.mean((h - mu) ** 2, axis=1, keepdims=True)
        h = (h - mu) * jax.lax.rsqrt(var + _LN_EPS) * g + be
        h = jax.nn.relu(h)
        return h @ w2.T + b2                                              # (B, C)

    out = x
    if "channel_mul" in fusions:
        out = out * jax.nn.sigmoid(mlp("mul"))[:, :, None, None]
    if "channel_add" in fusions:
        out = out + mlp("add")[:, :, None, None]
    return out


if __name__ == "__main__":
    N, C, P, H, W = 2, 4, 2, 16, 16   # batch=2, inplanes=4, planes=2, 16x16

    key = jax.random.PRNGKey(0)
    ks = iter(jax.random.split(key, 20))

    def mlp_params(prefix):
        return {
            prefix + "_w1": 0.5 * jax.random.normal(next(ks), (P, C, 1, 1), jnp.float32),
            prefix + "_b1": 0.1 * jax.random.normal(next(ks), (P,), jnp.float32),
            prefix + "_ln_g": 1.0 + 0.1 * jax.random.normal(next(ks), (P, 1, 1), jnp.float32),
            prefix + "_ln_b": 0.1 * jax.random.normal(next(ks), (P, 1, 1), jnp.float32),
            prefix + "_w2": 0.5 * jax.random.normal(next(ks), (C, P, 1, 1), jnp.float32),
            prefix + "_b2": 0.1 * jax.random.normal(next(ks), (C,), jnp.float32),
        }

    params = {
        "conv_mask_w": 0.5 * jax.random.normal(next(ks), (1, C, 1, 1), jnp.float32),
        "conv_mask_b": 0.1 * jax.random.normal(next(ks), (1,), jnp.float32),
    }
    params.update(mlp_params("add"))
    params.update(mlp_params("mul"))

    x = jax.random.normal(jax.random.PRNGKey(42), (N, C, H, W), jnp.float32)
    fus = ("channel_add", "channel_mul")

    # 1) att pool + both fusions, f32 (fused single-pass path).
    out1 = jax.block_until_ready(feablock_forward(x, params, pool="att", fusions=fus))
    ref1 = _ref_feablock(x, params, pool="att", fusions=fus)
    assert out1.shape == (N, C, H, W) and out1.dtype == x.dtype
    assert jnp.allclose(out1, ref1, rtol=1e-4, atol=1e-4), \
        float(jnp.max(jnp.abs(out1 - ref1)))

    # 2) avg pool + channel_add only, f32 (fused path).
    out2 = jax.block_until_ready(
        feablock_forward(x, params, pool="avg", fusions=("channel_add",)))
    ref2 = _ref_feablock(x, params, pool="avg", fusions=("channel_add",))
    assert jnp.allclose(out2, ref2, rtol=1e-4, atol=1e-4), \
        float(jnp.max(jnp.abs(out2 - ref2)))

    # 3) Two-phase tiled path (forced): 48x48 image -> 2 spatial tiles with a
    #    masked ragged last tile and cross-tile online softmax.
    x3 = jax.random.normal(jax.random.PRNGKey(7), (N, C, 48, 48), jnp.float32)
    out3 = jax.block_until_ready(
        feablock_forward(x3, params, pool="att", fusions=fus, fuse_max_elems=0))
    ref3 = _ref_feablock(x3, params, pool="att", fusions=fus)
    assert jnp.allclose(out3, ref3, rtol=1e-4, atol=1e-4), \
        float(jnp.max(jnp.abs(out3 - ref3)))

    # 3b) Two-phase tiled avg pool + channel_mul only.
    out4 = jax.block_until_ready(
        feablock_forward(x3, params, pool="avg", fusions=("channel_mul",),
                         fuse_max_elems=0))
    ref4 = _ref_feablock(x3, params, pool="avg", fusions=("channel_mul",))
    assert jnp.allclose(out4, ref4, rtol=1e-4, atol=1e-4), \
        float(jnp.max(jnp.abs(out4 - ref4)))

    # 4) bf16 I/O preserved end-to-end (halves HBM traffic vs the old f32 cast).
    x_bf = x.astype(jnp.bfloat16)
    out5 = jax.block_until_ready(feablock_forward(x_bf, params, pool="att", fusions=fus))
    assert out5.dtype == jnp.bfloat16
    ref5 = _ref_feablock(x_bf.astype(jnp.float32), params, pool="att", fusions=fus)
    assert jnp.allclose(out5.astype(jnp.float32), ref5, rtol=3e-2, atol=3e-2), \
        float(jnp.max(jnp.abs(out5.astype(jnp.float32) - ref5)))

    print("KERNEL_OK")
</pallas_src>

<mosaic_0001>
module attributes {stable_mosaic.version = 11 : i64} {
  func.func @kernel(%arg0: i32, %arg1: memref<1x4x256xf32, #tpu.memory_space<vmem>>, %arg2: memref<4x1xf32, #tpu.memory_space<vmem>>, %arg3: memref<1x1xf32, #tpu.memory_space<vmem>>, %arg4: memref<4x2xf32, #tpu.memory_space<vmem>>, %arg5: memref<1x2xf32, #tpu.memory_space<vmem>>, %arg6: memref<1x2xf32, #tpu.memory_space<vmem>>, %arg7: memref<1x2xf32, #tpu.memory_space<vmem>>, %arg8: memref<4x2xf32, #tpu.memory_space<vmem>>, %arg9: memref<4x1xf32, #tpu.memory_space<vmem>>, %arg10: memref<4x2xf32, #tpu.memory_space<vmem>>, %arg11: memref<1x2xf32, #tpu.memory_space<vmem>>, %arg12: memref<1x2xf32, #tpu.memory_space<vmem>>, %arg13: memref<1x2xf32, #tpu.memory_space<vmem>>, %arg14: memref<4x2xf32, #tpu.memory_space<vmem>>, %arg15: memref<4x1xf32, #tpu.memory_space<vmem>>, %arg16: memref<1x4x256xf32, #tpu.memory_space<vmem>>) attributes {dimension_semantics = [#tpu.dimension_semantics<parallel>], iteration_bounds = array<i64: 2>, scalar_prefetch = 0 : i64, scratch_operands = 0 : i64, tpu.core_type = #tpu.core_type<tc>, window_params = [{transform_indices = @transform_0, window_bounds = array<i64: 1, 4, 256>}, {pipeline_mode = #tpu.pipeline_mode<synchronous>, transform_indices = @transform_1, window_bounds = array<i64: 4, 1>}, {pipeline_mode = #tpu.pipeline_mode<synchronous>, transform_indices = @transform_2, window_bounds = array<i64: 1, 1>}, {pipeline_mode = #tpu.pipeline_mode<synchronous>, transform_indices = @transform_3, window_bounds = array<i64: 4, 2>}, {pipeline_mode = #tpu.pipeline_mode<synchronous>, transform_indices = @transform_4, window_bounds = array<i64: 1, 2>}, {pipeline_mode = #tpu.pipeline_mode<synchronous>, transform_indices = @transform_5, window_bounds = array<i64: 1, 2>}, {pipeline_mode = #tpu.pipeline_mode<synchronous>, transform_indices = @transform_6, window_bounds = array<i64: 1, 2>}, {pipeline_mode = #tpu.pipeline_mode<synchronous>, transform_indices = @transform_7, window_bounds = array<i64: 4, 2>}, {pipeline_mode = #tpu.pipeline_mode<synchronous>, transform_indices = @transform_8, window_bounds = array<i64: 4, 1>}, {pipeline_mode = #tpu.pipeline_mode<synchronous>, transform_indices = @transform_9, window_bounds = array<i64: 4, 2>}, {pipeline_mode = #tpu.pipeline_mode<synchronous>, transform_indices = @transform_10, window_bounds = array<i64: 1, 2>}, {pipeline_mode = #tpu.pipeline_mode<synchronous>, transform_indices = @transform_11, window_bounds = array<i64: 1, 2>}, {pipeline_mode = #tpu.pipeline_mode<synchronous>, transform_indices = @transform_12, window_bounds = array<i64: 1, 2>}, {pipeline_mode = #tpu.pipeline_mode<synchronous>, transform_indices = @transform_13, window_bounds = array<i64: 4, 2>}, {pipeline_mode = #tpu.pipeline_mode<synchronous>, transform_indices = @transform_14, window_bounds = array<i64: 4, 1>}, {transform_indices = @transform_15, window_bounds = array<i64: 1, 4, 256>}]} {
    %c0 = arith.constant 0 : index
    %c0_0 = arith.constant 0 : index
    %c0_1 = arith.constant 0 : index
    %0 = vector.load %arg1[%c0, %c0_0, %c0_1] : memref<1x4x256xf32, #tpu.memory_space<vmem>>, vector<1x4x256xf32>
    %1 = vector.shape_cast %0 : vector<1x4x256xf32> to vector<4x256xf32>
    %c0_2 = arith.constant 0 : index
    %c0_3 = arith.constant 0 : index
    %2 = vector.load %arg2[%c0_2, %c0_3] : memref<4x1xf32, #tpu.memory_space<vmem>>, vector<4x1xf32>
    %3 = vector.broadcast %2 : vector<4x1xf32> to vector<4x256xf32>
    %4 = arith.mulf %1, %3 : vector<4x256xf32>
    %cst = arith.constant dense<0.000000e+00> : vector<256xf32>
    %5 = vector.multi_reduction <add>, %4, %cst [0] : vector<4x256xf32> to vector<256xf32>
    %6 = vector.shape_cast %5 : vector<256xf32> to vector<1x256xf32>
    %c0_4 = arith.constant 0 : index
    %c0_5 = arith.constant 0 : index
    %7 = vector.load %arg3[%c0_4, %c0_5] : memref<1x1xf32, #tpu.memory_space<vmem>>, vector<1x1xf32>
    %8 = vector.broadcast %7 : vector<1x1xf32> to vector<1x256xf32>
    %9 = arith.addf %6, %8 : vector<1x256xf32>
    %cst_6 = arith.constant dense<0xFF800000> : vector<1xf32>
    %10 = vector.multi_reduction <maximumf>, %9, %cst_6 [1] : vector<1x256xf32> to vector<1xf32>
    %11 = vector.shape_cast %10 : vector<1xf32> to vector<1x1xf32>
    %12 = vector.broadcast %11 : vector<1x1xf32> to vector<1x256xf32>
    %13 = arith.subf %9, %12 : vector<1x256xf32>
    %14 = math.exp %13 : vector<1x256xf32>
    %15 = vector.broadcast %14 : vector<1x256xf32> to vector<4x256xf32>
    %16 = arith.mulf %1, %15 : vector<4x256xf32>
    %cst_7 = arith.constant dense<0.000000e+00> : vector<4xf32>
    %17 = vector.multi_reduction <add>, %16, %cst_7 [1] : vector<4x256xf32> to vector<4xf32>
    %18 = vector.shape_cast %17 : vector<4xf32> to vector<4x1xf32>
    %cst_8 = arith.constant dense<0.000000e+00> : vector<1xf32>
    %19 = vector.multi_reduction <add>, %14, %cst_8 [1] : vector<1x256xf32> to vector<1xf32>
    %20 = vector.shape_cast %19 : vector<1xf32> to vector<1x1xf32>
    %21 = vector.broadcast %20 : vector<1x1xf32> to vector<4x1xf32>
    %22 = arith.divf %18, %21 : vector<4x1xf32>
    %c0_9 = arith.constant 0 : index
    %c0_10 = arith.constant 0 : index
    %23 = vector.load %arg10[%c0_9, %c0_10] : memref<4x2xf32, #tpu.memory_space<vmem>>, vector<4x2xf32>
    %24 = vector.broadcast %22 : vector<4x1xf32> to vector<4x2xf32>
    %25 = arith.mulf %23, %24 : vector<4x2xf32>
    %cst_11 = arith.constant dense<0.000000e+00> : vector<2xf32>
    %26 = vector.multi_reduction <add>, %25, %cst_11 [0] : vector<4x2xf32> to vector<2xf32>
    %27 = vector.shape_cast %26 : vector<2xf32> to vector<1x2xf32>
    %c0_12 = arith.constant 0 : index
    %c0_13 = arith.constant 0 : index
    %28 = vector.load %arg11[%c0_12, %c0_13] : memref<1x2xf32, #tpu.memory_space<vmem>>, vector<1x2xf32>
    %29 = arith.addf %27, %28 : vector<1x2xf32>
    %cst_14 = arith.constant dense<0.000000e+00> : vector<1xf32>
    %30 = vector.multi_reduction <add>, %29, %cst_14 [1] : vector<1x2xf32> to vector<1xf32>
    %31 = vector.shape_cast %30 : vector<1xf32> to vector<1x1xf32>
    %cst_15 = arith.constant 2.000000e+00 : f32
    %32 = vector.broadcast %cst_15 : f32 to vector<1x1xf32>
    %33 = arith.divf %31, %32 : vector<1x1xf32>
    %34 = vector.broadcast %33 : vector<1x1xf32> to vector<1x2xf32>
    %35 = arith.subf %29, %34 : vector<1x2xf32>
    %36 = vector.broadcast %33 : vector<1x1xf32> to vector<1x2xf32>
    %37 = arith.subf %29, %36 : vector<1x2xf32>
    %38 = arith.mulf %35, %37 : vector<1x2xf32>
    %cst_16 = arith.constant dense<0.000000e+00> : vector<1xf32>
    %39 = vector.multi_reduction <add>, %38, %cst_16 [1] : vector<1x2xf32> to vector<1xf32>
    %40 = vector.shape_cast %39 : vector<1xf32> to vector<1x1xf32>
    %cst_17 = arith.constant 2.000000e+00 : f32
    %41 = vector.broadcast %cst_17 : f32 to vector<1x1xf32>
    %42 = arith.divf %40, %41 : vector<1x1xf32>
    %43 = vector.broadcast %33 : vector<1x1xf32> to vector<1x2xf32>
    %44 = arith.subf %29, %43 : vector<1x2xf32>
    %cst_18 = arith.constant 9.99999974E-6 : f32
    %45 = vector.broadcast %cst_18 : f32 to vector<1x1xf32>
    %46 = arith.addf %42, %45 : vector<1x1xf32>
    %47 = math.rsqrt %46 : vector<1x1xf32>
    %48 = vector.broadcast %47 : vector<1x1xf32> to vector<1x2xf32>
    %49 = arith.mulf %44, %48 : vector<1x2xf32>
    %c0_19 = arith.constant 0 : index
    %c0_20 = arith.constant 0 : index
    %50 = vector.load %arg12[%c0_19, %c0_20] : memref<1x2xf32, #tpu.memory_space<vmem>>, vector<1x2xf32>
    %51 = arith.mulf %49, %50 : vector<1x2xf32>
    %c0_21 = arith.constant 0 : index
    %c0_22 = arith.constant 0 : index
    %52 = vector.load %arg13[%c0_21, %c0_22] : memref<1x2xf32, #tpu.memory_space<vmem>>, vector<1x2xf32>
    %53 = arith.addf %51, %52 : vector<1x2xf32>
    %cst_23 = arith.constant 0.000000e+00 : f32
    %54 = vector.broadcast %cst_23 : f32 to vector<1x2xf32>
    %55 = arith.maximumf %53, %54 : vector<1x2xf32>
    %c0_24 = arith.constant 0 : index
    %c0_25 = arith.constant 0 : index
    %56 = vector.load %arg14[%c0_24, %c0_25] : memref<4x2xf32, #tpu.memory_space<vmem>>, vector<4x2xf32>
    %57 = vector.broadcast %55 : vector<1x2xf32> to vector<4x2xf32>
    %58 = arith.mulf %56, %57 : vector<4x2xf32>
    %cst_26 = arith.constant dense<0.000000e+00> : vector<4xf32>
    %59 = vector.multi_reduction <add>, %58, %cst_26 [1] : vector<4x2xf32> to vector<4xf32>
    %60 = vector.shape_cast %59 : vector<4xf32> to vector<4x1xf32>
    %c0_27 = arith.constant 0 : index
    %c0_28 = arith.constant 0 : index
    %61 = vector.load %arg15[%c0_27, %c0_28] : memref<4x1xf32, #tpu.memory_space<vmem>>, vector<4x1xf32>
    %62 = arith.addf %60, %61 : vector<4x1xf32>
    %cst_29 = arith.constant 5.000000e-01 : f32
    %63 = vector.broadcast %cst_29 : f32 to vector<4x1xf32>
    %64 = arith.mulf %63, %62 : vector<4x1xf32>
    %65 = math.tanh %64 : vector<4x1xf32>
    %cst_30 = arith.constant 1.000000e+00 : f32
    %66 = vector.broadcast %cst_30 : f32 to vector<4x1xf32>
    %67 = arith.addf %65, %66 : vector<4x1xf32>
    %cst_31 = arith.constant 5.000000e-01 : f32
    %68 = vector.broadcast %cst_31 : f32 to vector<4x1xf32>
    %69 = arith.mulf %68, %67 : vector<4x1xf32>
    %70 = vector.broadcast %69 : vector<4x1xf32> to vector<4x256xf32>
    %71 = arith.mulf %1, %70 : vector<4x256xf32>
    %c0_32 = arith.constant 0 : index
    %c0_33 = arith.constant 0 : index
    %72 = vector.load %arg4[%c0_32, %c0_33] : memref<4x2xf32, #tpu.memory_space<vmem>>, vector<4x2xf32>
    %73 = vector.broadcast %22 : vector<4x1xf32> to vector<4x2xf32>
    %74 = arith.mulf %72, %73 : vector<4x2xf32>
    %cst_34 = arith.constant dense<0.000000e+00> : vector<2xf32>
    %75 = vector.multi_reduction <add>, %74, %cst_34 [0] : vector<4x2xf32> to vector<2xf32>
    %76 = vector.shape_cast %75 : vector<2xf32> to vector<1x2xf32>
    %c0_35 = arith.constant 0 : index
    %c0_36 = arith.constant 0 : index
    %77 = vector.load %arg5[%c0_35, %c0_36] : memref<1x2xf32, #tpu.memory_space<vmem>>, vector<1x2xf32>
    %78 = arith.addf %76, %77 : vector<1x2xf32>
    %cst_37 = arith.constant dense<0.000000e+00> : vector<1xf32>
    %79 = vector.multi_reduction <add>, %78, %cst_37 [1] : vector<1x2xf32> to vector<1xf32>
    %80 = vector.shape_cast %79 : vector<1xf32> to vector<1x1xf32>
    %cst_38 = arith.constant 2.000000e+00 : f32
    %81 = vector.broadcast %cst_38 : f32 to vector<1x1xf32>
    %82 = arith.divf %80, %81 : vector<1x1xf32>
    %83 = vector.broadcast %82 : vector<1x1xf32> to vector<1x2xf32>
    %84 = arith.subf %78, %83 : vector<1x2xf32>
    %85 = vector.broadcast %82 : vector<1x1xf32> to vector<1x2xf32>
    %86 = arith.subf %78, %85 : vector<1x2xf32>
    %87 = arith.mulf %84, %86 : vector<1x2xf32>
    %cst_39 = arith.constant dense<0.000000e+00> : vector<1xf32>
    %88 = vector.multi_reduction <add>, %87, %cst_39 [1] : vector<1x2xf32> to vector<1xf32>
    %89 = vector.shape_cast %88 : vector<1xf32> to vector<1x1xf32>
    %cst_40 = arith.constant 2.000000e+00 : f32
    %90 = vector.broadcast %cst_40 : f32 to vector<1x1xf32>
    %91 = arith.divf %89, %90 : vector<1x1xf32>
    %92 = vector.broadcast %82 : vector<1x1xf32> to vector<1x2xf32>
    %93 = arith.subf %78, %92 : vector<1x2xf32>
    %cst_41 = arith.constant 9.99999974E-6 : f32
    %94 = vector.broadcast %cst_41 : f32 to vector<1x1xf32>
    %95 = arith.addf %91, %94 : vector<1x1xf32>
    %96 = math.rsqrt %95 : vector<1x1xf32>
    %97 = vector.broadcast %96 : vector<1x1xf32> to vector<1x2xf32>
    %98 = arith.mulf %93, %97 : vector<1x2xf32>
    %c0_42 = arith.constant 0 : index
    %c0_43 = arith.constant 0 : index
    %99 = vector.load %arg6[%c0_42, %c0_43] : memref<1x2xf32, #tpu.memory_space<vmem>>, vector<1x2xf32>
    %100 = arith.mulf %98, %99 : vector<1x2xf32>
    %c0_44 = arith.constant 0 : index
    %c0_45 = arith.constant 0 : index
    %101 = vector.load %arg7[%c0_44, %c0_45] : memref<1x2xf32, #tpu.memory_space<vmem>>, vector<1x2xf32>
    %102 = arith.addf %100, %101 : vector<1x2xf32>
    %cst_46 = arith.constant 0.000000e+00 : f32
    %103 = vector.broadcast %cst_46 : f32 to vector<1x2xf32>
    %104 = arith.maximumf %102, %103 : vector<1x2xf32>
    %c0_47 = arith.constant 0 : index
    %c0_48 = arith.constant 0 : index
    %105 = vector.load %arg8[%c0_47, %c0_48] : memref<4x2xf32, #tpu.memory_space<vmem>>, vector<4x2xf32>
    %106 = vector.broadcast %104 : vector<1x2xf32> to vector<4x2xf32>
    %107 = arith.mulf %105, %106 : vector<4x2xf32>
    %cst_49 = arith.constant dense<0.000000e+00> : vector<4xf32>
    %108 = vector.multi_reduction <add>, %107, %cst_49 [1] : vector<4x2xf32> to vector<4xf32>
    %109 = vector.shape_cast %108 : vector<4xf32> to vector<4x1xf32>
    %c0_50 = arith.constant 0 : index
    %c0_51 = arith.constant 0 : index
    %110 = vector.load %arg9[%c0_50, %c0_51] : memref<4x1xf32, #tpu.memory_space<vmem>>, vector<4x1xf32>
    %111 = arith.addf %109, %110 : vector<4x1xf32>
    %112 = vector.broadcast %111 : vector<4x1xf32> to vector<4x256xf32>
    %113 = arith.addf %71, %112 : vector<4x256xf32>
    %c0_52 = arith.constant 0 : index
    %c0_53 = arith.constant 0 : index
    %c0_54 = arith.constant 0 : index
    %114 = vector.load %arg16[%c0_52, %c0_53, %c0_54] : memref<1x4x256xf32, #tpu.memory_space<vmem>>, vector<1x4x256xf32>
    %115 = vector.shape_cast %114 : vector<1x4x256xf32> to vector<4x256xf32>
    %116 = vector.shape_cast %113 : vector<4x256xf32> to vector<1x4x256xf32>
    tpu.vector_store %arg16[%c0_52, %c0_53, %c0_54], %116 {strides = array<i32>} : memref<1x4x256xf32, #tpu.memory_space<vmem>>, vector<1x4x256xf32>,
    return
  }
  func.func @transform_0(%arg0: i32) -> (i32, i32, i32) {
    %c0_i32 = arith.constant 0 : i32
    %c0_i32_0 = arith.constant 0 : i32
    %c0_i32_1 = arith.constant 0 : i32
    return %arg0, %c0_i32, %c0_i32_0 : i32, i32, i32
  }
  func.func @transform_1(%arg0: i32) -> (i32, i32) {
    %c0_i32 = arith.constant 0 : i32
    %c0_i32_0 = arith.constant 0 : i32
    %c0_i32_1 = arith.constant 0 : i32
    return %c0_i32, %c0_i32_0 : i32, i32
  }
  func.func @transform_2(%arg0: i32) -> (i32, i32) {
    %c0_i32 = arith.constant 0 : i32
    %c0_i32_0 = arith.constant 0 : i32
    %c0_i32_1 = arith.constant 0 : i32
    return %c0_i32, %c0_i32_0 : i32, i32
  }
  func.func @transform_3(%arg0: i32) -> (i32, i32) {
    %c0_i32 = arith.constant 0 : i32
    %c0_i32_0 = arith.constant 0 : i32
    %c0_i32_1 = arith.constant 0 : i32
    return %c0_i32, %c0_i32_0 : i32, i32
  }
  func.func @transform_4(%arg0: i32) -> (i32, i32) {
    %c0_i32 = arith.constant 0 : i32
    %c0_i32_0 = arith.constant 0 : i32
    %c0_i32_1 = arith.constant 0 : i32
    return %c0_i32, %c0_i32_0 : i32, i32
  }
  func.func @transform_5(%arg0: i32) -> (i32, i32) {
    %c0_i32 = arith.constant 0 : i32
    %c0_i32_0 = arith.constant 0 : i32
    %c0_i32_1 = arith.constant 0 : i32
    return %c0_i32, %c0_i32_0 : i32, i32
  }
  func.func @transform_6(%arg0: i32) -> (i32, i32) {
    %c0_i32 = arith.constant 0 : i32
    %c0_i32_0 = arith.constant 0 : i32
    %c0_i32_1 = arith.constant 0 : i32
    return %c0_i32, %c0_i32_0 : i32, i32
  }
  func.func @transform_7(%arg0: i32) -> (i32, i32) {
    %c0_i32 = arith.constant 0 : i32
    %c0_i32_0 = arith.constant 0 : i32
    %c0_i32_1 = arith.constant 0 : i32
    return %c0_i32, %c0_i32_0 : i32, i32
  }
  func.func @transform_8(%arg0: i32) -> (i32, i32) {
    %c0_i32 = arith.constant 0 : i32
    %c0_i32_0 = arith.constant 0 : i32
    %c0_i32_1 = arith.constant 0 : i32
    return %c0_i32, %c0_i32_0 : i32, i32
  }
  func.func @transform_9(%arg0: i32) -> (i32, i32) {
    %c0_i32 = arith.constant 0 : i32
    %c0_i32_0 = arith.constant 0 : i32
    %c0_i32_1 = arith.constant 0 : i32
    return %c0_i32, %c0_i32_0 : i32, i32
  }
  func.func @transform_10(%arg0: i32) -> (i32, i32) {
    %c0_i32 = arith.constant 0 : i32
    %c0_i32_0 = arith.constant 0 : i32
    %c0_i32_1 = arith.constant 0 : i32
    return %c0_i32, %c0_i32_0 : i32, i32
  }
  func.func @transform_11(%arg0: i32) -> (i32, i32) {
    %c0_i32 = arith.constant 0 : i32
    %c0_i32_0 = arith.constant 0 : i32
    %c0_i32_1 = arith.constant 0 : i32
    return %c0_i32, %c0_i32_0 : i32, i32
  }
  func.func @transform_12(%arg0: i32) -> (i32, i32) {
    %c0_i32 = arith.constant 0 : i32
    %c0_i32_0 = arith.constant 0 : i32
    %c0_i32_1 = arith.constant 0 : i32
    return %c0_i32, %c0_i32_0 : i32, i32
  }
  func.func @transform_13(%arg0: i32) -> (i32, i32) {
    %c0_i32 = arith.constant 0 : i32
    %c0_i32_0 = arith.constant 0 : i32
    %c0_i32_1 = arith.constant 0 : i32
    return %c0_i32, %c0_i32_0 : i32, i32
  }
  func.func @transform_14(%arg0: i32) -> (i32, i32) {
    %c0_i32 = arith.constant 0 : i32
    %c0_i32_0 = arith.constant 0 : i32
    %c0_i32_1 = arith.constant 0 : i32
    return %c0_i32, %c0_i32_0 : i32, i32
  }
  func.func @transform_15(%arg0: i32) -> (i32, i32, i32) {
    %c0_i32 = arith.constant 0 : i32
    %c0_i32_0 = arith.constant 0 : i32
    %c0_i32_1 = arith.constant 0 : i32
    return %arg0, %c0_i32, %c0_i32_0 : i32, i32, i32
  }
}

</mosaic_0001>

<bundles_post_ra>
// kernel: tpu_custom_call.1
= control target key start
LH: loop header
LB: loop body
LE: loop exit
PB: predicated region body
PF: predicated region fallthrough
CT: control target
= control target key end

     0   :  { %s1140_s0 = inlined_call_operand.vmem [shape: f32[2,4,256], index: 0, kind: input, shape index: {}]   ;;  %s1141_s1 = inlined_call_operand.vmem [shape: f32[4,1], index: 1, kind: input, shape index: {}]   ;;  %s1142_s2 = inlined_call_operand.<no memory space> [shape: f32[1,1], index: 2, kind: input, shape index: {}]   ;;  %s1143_s3 = inlined_call_operand.vmem [shape: f32[4,2], index: 3, kind: input, shape index: {}]   ;;  %s1144_s4 = inlined_call_operand.vmem [shape: f32[1,2], index: 4, kind: input, shape index: {}]   ;;  %s1145_s5 = inlined_call_operand.vmem [shape: f32[1,2], index: 5, kind: input, shape index: {}]   ;;  %s1146_s6 = inlined_call_operand.vmem [shape: f32[1,2], index: 6, kind: input, shape index: {}]   ;;  %s1147_s7 = inlined_call_operand.vmem [shape: f32[4,2], index: 7, kind: input, shape index: {}]   ;;  %s1148_s8 = inlined_call_operand.vmem [shape: f32[4,1], index: 8, kind: input, shape index: {}]   ;;  %s1149_s9 = inlined_call_operand.vmem [shape: f32[4,2], index: 9, kind: input, shape index: {}]   ;;  %s1150_s10 = inlined_call_operand.vmem [shape: f32[1,2], index: 10, kind: input, shape index: {}]   ;;  %s1151_s11 = inlined_call_operand.vmem [shape: f32[1,2], index: 11, kind: input, shape index: {}]   ;;  %s1152_s12 = inlined_call_operand.vmem [shape: f32[1,2], index: 12, kind: input, shape index: {}]   ;;  %s1153_s13 = inlined_call_operand.vmem [shape: f32[4,2], index: 13, kind: input, shape index: {}]   ;;  %s1154_s14 = inlined_call_operand.vmem [shape: f32[4,1], index: 14, kind: input, shape index: {}]   ;;  %s1155_s15 = inlined_call_operand.hbm [shape: f32[2,4,256], index: 15, kind: output, shape index: {}]  }
   0x1   :  { %1156 = sst [smem:[#allocation6_spill]] %s1140_s0  ;;  %v20_v0 = vstv %s1142_s2 }
   0x2   :  { %1157 = sst [smem:[#allocation7_spill]] %s1141_s1  ;;  %21 = vst [vmem:[#allocation2] sm:$0x1] %v20_v0 }
   0x3   :  { %1158 = sst [smem:[#allocation8_spill]] %s1143_s3 }
   0x4   :  { %1159 = sst [smem:[#allocation9_spill]] %s1144_s4 }
   0x5   :  { %22 = vsyncpa [#allocation4], 0 }
   0x6   :  { %24 = vsyncpa [#allocation4 + $0x1], 0  ;;  %s974_s20 = smov 0   ;;  %s976_s21 = smov 0  }
   0x7   :  { %s978_s22 = smov 0   ;;  %s980_s23 = smov 0  }
   0x8 LB: > { %s995_s2 = sadd.s32 4294967295, %s886_s23   ;;  %s755_s24 = sadd.s32 4294967294, %s886_s23   ;;  %s886_s23 = sphi %s980_s23, %s1169_s23   ;;  %s882_s22 = sphi %s978_s22, %s1168_s22   ;;  %s878_s21 = sphi %s976_s21, %s1167_s21   ;;  %s874_s20 = sphi %s974_s20, %s1166_s20  }
   0x9   : > { %s999_s25 = sadd.s32 1, %s886_s23   ;;  %s357_s26 = sadd.s32 1, %s882_s22 }
   0xa   : > { %s354_s27 = ssub.s32 %s886_s23, %s999_s25  ;;  %p367_p0 = scmp.ne.s32.totalorder %s882_s22, %s878_s21 }
   0xb   : > { %p355_p1 = scmp.eq.s32.totalorder %s354_s27, 0  ;;  %p368_p2 = scmp.eq.s32.totalorder %s995_s2, 1 }
   0xc   : > { %p373_p3 = scmp.ne.s32.totalorder %s878_s21, %s874_s20  ;;  %p374_p4 = scmp.eq.s32.totalorder %s755_s24, 1 }
   0xd   : > { %s1010_s28 = scalar_select %p355_p1, %s882_s22, %s357_s26  }
   0xe   : > { %p1012_p5 = por %p368_p2, %p367_p0  ;;  %p1016_p6 = por %p374_p4, %p373_p3 }
   0xf   : > { %p758_p7 = scmp.ge.s32.totalorder %s886_s23, 1  ;;  %p442_p8 = scmp.lt.s32.totalorder %s886_s23, 3 }
  0x11   : > { %p443_p9 = pnand %p758_p7, %p442_p8 }
  0x12   : > { %s1162_s1 = sld [smem:[#allocation7_spill]] (!%p443_p9)  ;;  %v888_v2 = vmov (!%p443_p9), 0   ;;  %v528_v3 = vld [vmem:[#allocation2] sm:$0x1] (!%p443_p9)  ;;  %p490_p10 = scmp.lt.s32.totalorder (!%p443_p9), %s995_s2, 1  ;;  %v504_v6 = vlaneseq (!%p443_p9)  ;;  %vm513_vm0 = vcmask (!%p443_p9), 1043456  }
  0x13   : > { %446 = sbr.rel (%p443_p9) target bundleno = 1137 (0x471), region = 80  ;;  %810 = vset.pattern.permute.xlu0 (!%p443_p9), %v888_v2  ;;  %811 = vset.pattern.permute.xlu1 (!%p443_p9), %v888_v2  ;;  %v889_v4 = vmov (!%p443_p9), 839922192   ;;  %s1163_s0 = sld [smem:[#allocation6_spill]] (!%p443_p9)  ;;  %v567_v51 = vld [vmem:[%s1149_s9] sm:$0xf] (!%p443_p9) }
  0x14   : > { %v502_v5 = vunpack.c.l.s4 (!%p443_p9), %v889_v4  ;;  %v505_v8 = vshrl.u32 (!%p443_p9), %v504_v6, 7  ;;  %s1164_s3 = sld [smem:[#allocation8_spill]] (!%p443_p9)  ;;  %vm569_vm1 = vcmask (!%p443_p9), 11264   ;;  %vm579_vm2 = vcmask (!%p443_p9), 8192   ;;  %s1165_s4 = sld [smem:[#allocation9_spill]] (!%p443_p9) }
  0x15   : > { %s487_s17 = sand.u32 (!%p443_p9), 1, %s878_s21  }
  0x16   : > { %v503_v7 = vunpack.c.0.s8 (!%p443_p9), %v502_v5  ;;  %v1038_v24 = vsub.s32 (!%p443_p9), 0, %v505_v8  ;;  %v577_v5 = vld [vmem:[%s1150_s10] sm:$0x1] (!%p443_p9) }
  0x18   : > { %v496_v1 = vld [vmem:[%s1162_s1] sm:$0xf] (!%p443_p9)  ;;  %v1027_v9 = vsub.s32 (!%p443_p9), %v503_v7, %v505_v8  ;;  %s682_s1 = scalar_lea.sflag (!%p443_p9), [#allocation4], %s487_s17 }
  0x19   : > { %499 = vperm.xlu0 (!%p443_p9), %810, %v496_v1  }
  0x1a   : > { %s491_s18 = scalar_select %p490_p10, %s995_s2, 1  ;;  %v627_v52 = vld [vmem:[%s1164_s3] sm:$0xf] }
  0x1b   : > { %v636_v8 = vld [vmem:[%s1165_s4] sm:$0x1] }
  0x1c   : > { %s767_s19 = sshll.u32 %s491_s18, 3  ;;  %s759_s18 = sshll.u32 %s487_s17, 3 }
  0x1d   : > { %531 = vperm.xlu0 %810, %v528_v3   ;;  %s494_s27 = scalar_lea.vmem %s1163_s0, %s767_s19  ;;  %s768_s19 = sshll.u32 %s995_s2, 7 }
  0x1e   : > { %v1032_v11 = vld [vmem:[%s494_s27] sm:$0xff]  ;;  %s489_s24 = scalar_lea.vmem [#allocation3], %s759_s18  ;;  %s1098_s16 = scalar_lea.hbm %s1155_s15, %s768_s19 }
  0x1f   : > { %s696_s0 = sshll.u32 %s489_s24, 4  ;;  %s890_s18 = smov [#allocation3]   ;;  %s1100_s0 = int_to_ptr.vmem [resolvable:$true] %s696_s0 }
  0x20   : > { %s824_s2 = scalar_lea.vmem %s1100_s0, 128  ;;  %s828_s3 = sshll.u32 %s890_s18, 4  ;;  %s829_s3 = int_to_ptr.vmem [resolvable:$false] %s828_s3 }
  0x21   : > { %p825_p11 = scmp.ne.s32.totalorder %s1100_s0, %s824_s2  ;;  %s830_s4 = scalar_lea.vmem %s829_s3, 256 }
  0x22   : > { %p831_p0 = scmp.lt.s32.totalorder %s1100_s0, %s829_s3  ;;  %p832_p1 = scmp.lt.s32.totalorder %s830_s4, %s824_s2 }
  0x23   : > { %p826_p12 = pnand %p825_p11, %p1012_p5 }
  0x24   : > { %p833_p2 = por %p832_p1, %p831_p0 }
  0x25   : > { %p827_p13 = pneg %p826_p12 }
  0x27   : > { %p834_p3 = pnand %p833_p2, %p827_p13 }
  0x98   : > { %v500_v10 = vpop.permute.xlu0 %499 }
  0x99   : > { %v507_v12 = vrot.slane %v500_v10, %v1027_v9 }
  0x9b   : > { %v509_v13 = vmul.f32 %v507_v12, %v1032_v11 }
  0x9c   : > { %v532_v27 = vpop.permute.xlu0 %531 }
  0x9d   : > { %v511_v14 = vcombine.high %v509_v13, %v509_v13  ;;  %v514_v15 = vsel %vm513_vm0, %v509_v13, 0.0  ;;  %v537_v30 = vrot.slane %v532_v27, %v1038_v24 }
  0x9e   : > { %v515_v16 = vrot.slane %v514_v15, 4 }
  0x9f   : > { %v521_v17 = vsel %vm513_vm0, %v511_v14, 0.0 }
  0xa0   : > { %v516_v18 = vadd.f32 %v515_v16, %v514_v15  ;;  %v522_v19 = vrot.slane %v521_v17, 4 }
  0xa2   : > { %v517_v20 = vrot.slane %v516_v18, 2  ;;  %v523_v21 = vadd.f32 %v522_v19, %v521_v17 }
  0xa4   : > { %v518_v22 = vadd.f32 %v517_v20, %v516_v18  ;;  %v524_v23 = vrot.slane %v523_v21, 2 }
  0xa6   : > { %v519_v25 = vrot.slane %v518_v22, 1  ;;  %v525_v26 = vadd.f32 %v524_v23, %v523_v21 }
  0xa8   : > { %v520_v28 = vadd.f32 %v519_v25, %v518_v22  ;;  %v526_v29 = vrot.slane %v525_v26, 1 }
  0xaa   : > { %v527_v31 = vadd.f32 %v526_v29, %v525_v26  ;;  %v538_v32 = vadd.f32 %v537_v30, %v520_v28 }
  0xac   : > { %v539_v33 = vadd.f32 %v537_v30, %v527_v31 }
  0xae   : > { %v540_v34 = vmax.f32 %v538_v32, %v539_v33 }
  0xb0   : > { %541 = vmax.xlane.f32.xlu1 %v540_v34 }
 0x13d   : > { %v542_v35 = vpop.xlane.xlu1 %541 }
 0x13e   : > { %v543_v36 = vsub.f32 %v538_v32, %v542_v35  ;;  %v544_v37 = vsub.f32 %v539_v33, %v542_v35  ;;  %v594_v33 = vld [vmem:[%s1151_s11] sm:$0x1] }
 0x13f   : > { %v596_v35 = vld [vmem:[%s1152_s12] sm:$0x1] }
 0x140   : > { %v545_v38 = vmul.f32 1.442695, %v543_v36  ;;  %v547_v39 = vmul.f32 1.442695, %v544_v37 }
 0x142   : > { %812 = vpow2.f32 %v545_v38  ;;  %v651_v38 = vld [vmem:[%s1145_s5] sm:$0x1] }
 0x143   : > { %814 = vpow2.f32 %v547_v39 }
 0x14c   : > { %v813_v40 = vpop.eup %812 }
 0x14d   : > { %v815_v41 = vpop.eup %814 }
 0x14e   : > { %v562_v42 = vadd.f32 %v815_v41, %v813_v40  ;;  %v551_v43 = vcombine.low %v813_v40, %v815_v41  ;;  %v653_v41 = vld [vmem:[%s1146_s6] sm:$0x1] }
 0x150   : > { %563 = vadd.xlane.f32.xlu1 %v562_v42  ;;  %v553_v44 = vmul.f32 %v551_v43, %v1032_v11 }
 0x152   : > { %v555_v45 = vcombine.high %v553_v44, %v553_v44  ;;  %v557_v46 = vsel %vm513_vm0, %v553_v44, 0.0  ;;  %v599_v44 = vld [vmem:[%s1153_s13] sm:$0xf] }
 0x154   : > { %v558_v47 = vsel %vm513_vm0, %v555_v45, 0.0 }
 0x155   : > { %v559_v48 = vadd.f32 %v558_v47, %v557_v46 }
 0x157   : > { %560 = vadd.xlane.f32.xlu0 %v559_v48 }
 0x1dd   : > { %v564_v49 = vpop.xlane.xlu1 %563 }
 0x1de   : > { %816 = vrcp.f32 %v564_v49  ;;  %v656_v49 = vld [vmem:[%s1147_s7] sm:$0xf] }
 0x1e4   : > { %v561_v53 = vpop.xlane.xlu0 %560 }
 0x1e8   : > { %v817_v50 = vpop.eup %816 }
 0x1e9   : > { %v566_v54 = vmul.f32 %v817_v50, %v561_v53 }
 0x1eb   : > { %v568_v55 = vmul.f32 %v567_v51, %v566_v54  ;;  %v628_v56 = vmul.f32 %v627_v52, %v566_v54  ;;  %v608_v54 = vld [vmem:[%s1154_s14] sm:$0xf] }
 0x1ed   : > { %v570_v57 = vsel %vm569_vm1, %v568_v55, 0.0  ;;  %v629_v58 = vsel %vm569_vm1, %v628_v56, 0.0 }
 0x1ee   : > { %v571_v59 = vrot.slane %v570_v57, 4  ;;  %v630_v60 = vrot.slane %v629_v58, 4 }
 0x1f0   : > { %v572_v61 = vadd.f32 %v571_v59, %v570_v57  ;;  %v631_v62 = vadd.f32 %v630_v60, %v629_v58  ;;  %v665_v57 = vld [vmem:[%s1148_s8] sm:$0xf] }
 0x1f2   : > { %v573_v63 = vrot.slane %v572_v61, 2  ;;  %v632_v0 = vrot.slane %v631_v62, 2 }
 0x1f4   : > { %v574_v1 = vadd.f32 %v573_v63, %v572_v61  ;;  %v633_v2 = vadd.f32 %v632_v0, %v631_v62 }
 0x1f6   : > { %v575_v3 = vrot.slane %v574_v1, 1  ;;  %v634_v4 = vrot.slane %v633_v2, 1 }
 0x1f8   : > { %v576_v6 = vadd.f32 %v575_v3, %v574_v1  ;;  %v635_v7 = vadd.f32 %v634_v4, %v633_v2 }
 0x1fa   : > { %v578_v10 = vadd.f32 %v577_v5, %v576_v6  ;;  %v637_v13 = vadd.f32 %v636_v8, %v635_v7 }
 0x1fc   : > { %v580_v12 = vsel %vm579_vm2, %v578_v10, 0.0  ;;  %v638_v14 = vsel %vm579_vm2, %v637_v13, 0.0 }
 0x1fd   : > { %581 = vadd.xlane.f32.xlu1 %v580_v12 }
 0x201   : > { %639 = vadd.xlane.f32.xlu1 %v638_v14 }
 0x28a   : > { %v582_v15 = vpop.xlane.xlu1 %581 }
 0x28b   : > { %v584_v16 = vmul.f32 0.5, %v582_v15 }
 0x28d   : > { %v585_v17 = vsub.f32 %v578_v10, %v584_v16 }
 0x28e   : > { %v640_v18 = vpop.xlane.xlu1 %639 }
 0x28f   : > { %v641_v19 = vmul.f32 0.5, %v640_v18  ;;  %v586_v20 = vmul.f32 %v585_v17, %v585_v17 }
 0x291   : > { %v642_v21 = vsub.f32 %v637_v13, %v641_v19  ;;  %v587_v22 = vsel %vm579_vm2, %v586_v20, 0.0 }
 0x292   : > { %588 = vadd.xlane.f32.xlu1 %v587_v22 }
 0x293   : > { %v643_v23 = vmul.f32 %v642_v21, %v642_v21 }
 0x295   : > { %v644_v25 = vsel %vm579_vm2, %v643_v23, 0.0 }
 0x296   : > { %645 = vadd.xlane.f32.xlu1 %v644_v25 }
 0x31f   : > { %v589_v26 = vpop.xlane.xlu1 %588 }
 0x320   : > { %v590_v27 = vmul.f32 0.5, %v589_v26 }
 0x322   : > { %v591_v28 = vadd.f32 1e-05, %v590_v27 }
 0x323   : > { %v646_v29 = vpop.xlane.xlu1 %645 }
 0x324   : > { %818 = vrsqrt.f32 %v591_v28  ;;  %v647_v30 = vmul.f32 0.5, %v646_v29 }
 0x326   : > { %v648_v31 = vadd.f32 1e-05, %v647_v30 }
 0x328   : > { %820 = vrsqrt.f32 %v648_v31 }
 0x32e   : > { %v819_v32 = vpop.eup %818 }
 0x32f   : > { %v593_v34 = vmul.f32 %v819_v32, %v585_v17 }
 0x331   : > { %v595_v36 = vmul.f32 %v594_v33, %v593_v34 }
 0x332   : > { %v821_v37 = vpop.eup %820 }
 0x333   : > { %v597_v39 = vadd.f32 %v596_v35, %v595_v36  ;;  %v650_v40 = vmul.f32 %v821_v37, %v642_v21 }
 0x335   : > { %v598_v42 = vmax.f32 %v597_v39, 0.0  ;;  %v652_v43 = vmul.f32 %v651_v38, %v650_v40 }
 0x337   : > { %v603_v45 = vrot.slane %v598_v42, %v1038_v24  ;;  %v654_v46 = vadd.f32 %v653_v41, %v652_v43 }
 0x339   : > { %v604_v47 = vmul.f32 %v603_v45, %v599_v44  ;;  %v655_v48 = vmax.f32 %v654_v46, 0.0 }
 0x33b   : > { %v605_v50 = vsel %vm569_vm1, %v604_v47, 0.0  ;;  %v660_v51 = vrot.slane %v655_v48, %v1038_v24 }
 0x33c   : > { %606 = vadd.xlane.f32.xlu1 %v605_v50 }
 0x33d   : > { %v661_v52 = vmul.f32 %v660_v51, %v656_v49 }
 0x33f   : > { %v662_v53 = vsel %vm569_vm1, %v661_v52, 0.0 }
 0x340   : > { %663 = vadd.xlane.f32.xlu1 %v662_v53 }
 0x3c9   : > { %v607_v55 = vpop.xlane.xlu1 %606 }
 0x3ca   : > { %v609_v56 = vadd.f32 %v608_v54, %v607_v55 }
 0x3cc   : > { %v610_v58 = vmul.f32 0.5, %v609_v56 }
 0x3cd   : > { %v664_v59 = vpop.xlane.xlu1 %663 }
 0x3ce   : > { %822 = vtanh.f32 %v610_v58  ;;  %v666_v24 = vadd.f32 %v665_v57, %v664_v59 }
 0x3d0   : > { %669 = vperm.xlu0 %810, %v666_v24  }
 0x3d8   : > { %v823_v60 = vpop.eup %822 }
 0x3d9   : > { %v612_v61 = vadd.f32 1.0, %v823_v60 }
 0x3db   : > { %v613_v62 = vmul.f32 0.5, %v612_v61 }
 0x3dd   : > { %616 = vperm.xlu1 %811, %v613_v62  }
 0x44f   : > { %v670_v63 = vpop.permute.xlu0 %669 }
 0x450   : > { %v677_v2 = vrot.slane %v670_v63, %v1027_v9 }
 0x45c   : > { %v617_v0 = vpop.permute.xlu1 %616 }
 0x45d   : > { %v624_v1 = vrot.slane %v617_v0, %v1027_v9 }
 0x45f   : > { %v626_v3 = vmul.f32 %v624_v1, %v1032_v11 }
 0x461   : > { %v679_v4 = vadd.f32 %v677_v2, %v626_v3 }
 0x463   : > { %680 = vst [vmem:[%s489_s24] sm:$0xff] %v679_v4 }
 0x464   : > { %837 = shalt.err (!%p834_p3)
}
 0x465   : > { %s838_s17 = scalar_lea.hbm %s1098_s16, 128  ;;  %s842_s26 = scalar_lea.hbm %s1155_s15, 256 }
 0x466   : > { %p839_p4 = scmp.ne.s32.totalorder %s1098_s16, %s838_s17  ;;  %p843_p9 = scmp.lt.u32.totalorder %s1098_s16, %s1155_s15 }
 0x467   : > { %p844_p10 = scmp.lt.u32.totalorder %s842_s26, %s838_s17  ;;  %p846_p12 = scmp.lt.u32.totalorder %s838_s17, %s1098_s16 }
 0x468   : > { %p840_p7 = pnand %p839_p4, %p1012_p5 }
 0x469   : > { %p845_p11 = por %p844_p10, %p843_p9 }
 0x46a   : > { %p841_p8 = pneg %p840_p7 }
 0x46b   : > { %p847_p13 = por %p846_p12, %p845_p11 }
 0x46d   : > { %p848_p0 = pnand %p847_p13, %p841_p8 }
 0x46f   : > { %851 = shalt.err (!%p848_p0)
}
 0x470   : > { %769 = dma.vmem_to_hbm [thread:$0]  (%p1012_p5), %s1100_s0, 128, %s1098_s16, %s682_s1  }
 0x471 PF: > { %p775_p1 = scmp.ge.s32.totalorder %s886_s23, 2  ;;  %s708_s4 = sand.u32 1, %s874_s20  }
 0x472   : > { %s709_s2 = scalar_lea.sflag [#allocation4], %s708_s4 }
 0x473   : > { %p772_p2 = pnand %p775_p1, %p1016_p6 }
 0x475   : > { %869 = dma.done.wait (!%p772_p2), %s709_s2, 128  }
 0x476   : > { %871 = vsyncadd (!%p772_p2), %s709_s2, 4294967168  ;;  %p27_p3 = scmp.ge.s32.totalorder %s999_s25, 4   ;;  %s1166_s20 = smov %s878_s21 }
 0x477   : > { %s1167_s21 = smov %s882_s22  ;;  %s1168_s22 = smov %s1010_s28 }
 0x478   : > { %s1169_s23 = smov %s999_s25  ;;  %29 = sbr.rel (!%p27_p3) target bundleno = 8 (0x8), region = 115 }
 0x47f   :  { %714 = vsyncpa [#allocation4], 1 }
 0x480   :  { %716 = vsyncpa [#allocation4 + $0x1], 1 }

</bundles_post_ra>
